<compile_context>
chip_gen: v5e
topology: v5e:2x2
jax: 0.10.0
libtpu: 0.0.40
codegen_flags: <defaults>
</compile_context>

<pallas_src>
import functools

import jax
import jax.numpy as jnp
from jax import lax
from jax.experimental import pallas as pl
from jax.experimental.pallas import tpu as pltpu


# -----------------------------------------------------------------------------
# Hardware-aware sizing helpers
# -----------------------------------------------------------------------------
def _vmem_capacity_bytes():
    try:
        return int(pltpu.get_tpu_info().vmem_capacity_bytes)
    except Exception:
        return 64 << 20  # conservative fallback (v7x-sized)


def _tile_budget_bytes():
    # raw bf16 input-tile budget; the in-kernel blow-up (halo-padded copy, 3*Cin
    # lane-concat operand, f32 accumulator, double-buffered in/out blocks) is ~8-10x.
    cap = _vmem_capacity_bytes()
    return (4 << 20) if cap >= (96 << 20) else (2 << 20)


def _compiler_params(semantics):
    cap = _vmem_capacity_bytes()
    return pltpu.CompilerParams(
        dimension_semantics=semantics,
        vmem_limit_bytes=min((cap * 3) // 4, 100 << 20))


def _pick_tile_h(num_rows, bytes_per_row):
    """Largest divisor of num_rows whose raw tile stays under the budget."""
    budget = _tile_budget_bytes()
    best = 1
    for th in range(1, num_rows + 1):
        if num_rows % th == 0 and th * bytes_per_row <= budget:
            best = th
    return best


def _const_spec(shape):
    """BlockSpec for a grid-invariant operand; single-buffered (no point in
    double-buffering a block whose index never changes)."""
    zeros = tuple(0 for _ in shape)
    idx = lambda n, t: zeros
    try:
        return pl.BlockSpec(shape, idx, pipeline_mode=pl.Buffered(1))
    except TypeError:  # older API without pipeline_mode
        return pl.BlockSpec(shape, idx)


# -----------------------------------------------------------------------------
# Kernel 1: per-tile (sum, sumsq) of an activation tensor (block-input stats only;
# all other GroupNorm stats come for free from the conv epilogues).
# -----------------------------------------------------------------------------
def _tile_sums_kernel(x_ref, o_ref):
    TH, W, C = x_ref.shape
    x = x_ref[...].reshape(TH * W, C).astype(jnp.float32)
    s = jnp.sum(x, axis=0, keepdims=True)
    ss = jnp.sum(x * x, axis=0, keepdims=True)
    o_ref[...] = jnp.concatenate([s, ss], axis=0)


def tile_sums(x, tile_h=None):
    """x: (N, H, W, C) -> (N, 2, C) f32 per-(sample, channel) [sum; sumsq]."""
    N, H, W, C = x.shape
    TH = tile_h if tile_h is not None else _pick_tile_h(H, W * C * 2)
    T = H // TH
    part = pl.pallas_call(
        _tile_sums_kernel,
        grid=(N, T),
        in_specs=[pl.BlockSpec((None, TH, W, C), lambda n, t: (n, t, 0, 0))],
        out_specs=pl.BlockSpec((None, None, 2, C), lambda n, t: (n, t, 0, 0)),
        out_shape=jax.ShapeDtypeStruct((N, T, 2, C), jnp.float32),
        compiler_params=_compiler_params(("parallel", "parallel")),
    )(x)
    return jnp.sum(part, axis=1)


def _finalize_gn(sums, gamma, beta, hw, groups, eps):
    """(N,2,C) [sum; sumsq] -> (N,2,C) [scale; shift] for fused GroupNorm. Tiny JAX."""
    N, _, C = sums.shape
    cg = C // groups
    cnt = jnp.float32(hw * cg)
    s = sums[:, 0, :].reshape(N, groups, cg)
    ss = sums[:, 1, :].reshape(N, groups, cg)
    mean = jnp.sum(s, axis=-1, keepdims=True) / cnt
    ex2 = jnp.sum(ss, axis=-1, keepdims=True) / cnt
    var = jnp.maximum(ex2 - mean * mean, 0.0)          # guard cancellation
    inv = lax.rsqrt(var + jnp.float32(eps))
    mean_c = jnp.broadcast_to(mean, (N, groups, cg)).reshape(N, C)
    inv_c = jnp.broadcast_to(inv, (N, groups, cg)).reshape(N, C)
    scale = inv_c * gamma.reshape(1, C).astype(jnp.float32)
    shift = beta.reshape(1, C).astype(jnp.float32) - mean_c * scale
    return jnp.stack([scale, shift], axis=1)           # (N, 2, C) f32


# -----------------------------------------------------------------------------
# Kernel 2: fused [GroupNorm+SiLU] -> conv3x3 (pad 1) [-> + residual / 1x1 shortcut]
#            [-> (sum, sumsq) of the output tile for the next GroupNorm]
# -----------------------------------------------------------------------------
def _fused_conv3x3_kernel(TH, W, apply_act, has_res, has_proj, emit_stats, *refs):
    i = 0
    x_ref = refs[i]; i += 1
    top_ref = refs[i]; i += 1
    bot_ref = refs[i]; i += 1
    stats_ref = None
    if apply_act:
        stats_ref = refs[i]; i += 1
    w_ref = refs[i]; i += 1          # (3, 3*Cin, Cout) bf16
    b_ref = refs[i]; i += 1          # (1, Cout) f32
    r_ref = pw_ref = pb_ref = None
    if has_res:
        r_ref = refs[i]; i += 1
    if has_proj:
        pw_ref = refs[i]; i += 1
        pb_ref = refs[i]; i += 1
    o_ref = refs[i]; i += 1
    st_ref = None
    if emit_stats:
        st_ref = refs[i]; i += 1

    t = pl.program_id(1)
    n_t = pl.num_programs(1)
    Cin = x_ref.shape[-1]
    Cout = o_ref.shape[-1]

    if apply_act:
        scale = stats_ref[0:1, :].reshape(1, 1, Cin)
        shift = stats_ref[1:2, :].reshape(1, 1, Cin)

    def prep(v):
        # GroupNorm affine + SiLU in f32, then bf16 operands for the MXU.
        if not apply_act:
            return v.astype(jnp.bfloat16)
        vf = v.astype(jnp.float32) * scale + shift
        # SiLU: x * sigmoid(x); sigmoid via EUP exp + approx reciprocal (off the VPU).
        vf = vf * pl.reciprocal(1.0 + jnp.exp(-vf), approx=True)
        return vf.astype(jnp.bfloat16)

    body = prep(x_ref[...])                                   # (TH, W, Cin)
    top = prep(top_ref[...])                                  # (1,  W, Cin)
    bot = prep(bot_ref[...])                                  # (1,  W, Cin)
    # zero the halo rows at the image boundary (conv zero-padding, post-activation)
    top = jnp.where(t > 0, top, jnp.zeros_like(top))
    bot = jnp.where(t < n_t - 1, bot, jnp.zeros_like(bot))

    zcol = jnp.zeros((TH + 2, 1, Cin), jnp.bfloat16)
    xpad = jnp.concatenate([top, body, bot], axis=0)          # (TH+2, W,   Cin)
    xpad = jnp.concatenate([zcol, xpad, zcol], axis=1)        # (TH+2, W+2, Cin)

    # Hoisted width-shift concat: build the (kw, Cin)-packed K=3*Cin operand ONCE,
    # flattened so each kernel row is just a contiguous sublane window.
    xcat = jnp.concatenate(
        [xpad[:, 0:W, :], xpad[:, 1:W + 1, :], xpad[:, 2:W + 2, :]],
        axis=-1).reshape((TH + 2) * W, 3 * Cin)               # ((TH+2)*W, 3*Cin)

    # 3 fat matmuls (one per kernel row); accumulate locally in f32 (no scratch).
    acc = jnp.dot(xcat[0 * W:TH * W], w_ref[0], preferred_element_type=jnp.float32)
    acc = acc + jnp.dot(xcat[1 * W:(TH + 1) * W], w_ref[1],
                        preferred_element_type=jnp.float32)
    acc = acc + jnp.dot(xcat[2 * W:(TH + 2) * W], w_ref[2],
                        preferred_element_type=jnp.float32)
    acc = acc + b_ref[...]

    if has_res:
        r = r_ref[...]
        if has_proj:
            rflat = r.reshape(TH * W, r.shape[-1]).astype(jnp.bfloat16)
            acc = acc + (jnp.dot(rflat, pw_ref[...],
                                 preferred_element_type=jnp.float32) + pb_ref[...])
        else:
            acc = acc + r.reshape(TH * W, Cout).astype(jnp.float32)

    o_ref[...] = acc.reshape(TH, W, Cout).astype(o_ref.dtype)

    if emit_stats:
        # per-tile (sum, sumsq) of the freshly computed output -> next GroupNorm
        st_ref[...] = jnp.concatenate(
            [jnp.sum(acc, axis=0, keepdims=True),
             jnp.sum(acc * acc, axis=0, keepdims=True)], axis=0)


def conv3x3_fused(x, w, b, *, stats=None, residual=None, proj_w=None, proj_b=None,
                  emit_stats=False, tile_h=None):
    """Fused [norm+SiLU] -> 3x3 conv (stride 1, pad 1) [-> + residual / 1x1 shortcut].

    Returns (y, sums) where sums is (N, 2, Cout) f32 [sum; sumsq] of y (or None).
    """
    N, H, W, Cin = x.shape
    Cout = w.shape[-1]
    apply_act = stats is not None
    has_res = residual is not None
    has_proj = proj_w is not None
    assert not has_proj or has_res
    TH = tile_h if tile_h is not None else _pick_tile_h(H, W * max(Cin, Cout) * 2)
    T = H // TH

    w3 = w.astype(jnp.bfloat16).reshape(3, 3 * Cin, Cout)
    b2 = b.astype(jnp.float32).reshape(1, Cout)

    in_specs = [
        pl.BlockSpec((None, TH, W, Cin), lambda n, t: (n, t, 0, 0)),
        # 1-row top/bottom halos of the same tensor (clamped; masked in-kernel)
        pl.BlockSpec((None, 1, W, Cin),
                     lambda n, t: (n, jnp.maximum(t * TH - 1, 0), 0, 0)),
        pl.BlockSpec((None, 1, W, Cin),
                     lambda n, t: (n, jnp.minimum((t + 1) * TH, H - 1), 0, 0)),
    ]
    args = [x, x, x]
    if apply_act:
        in_specs.append(pl.BlockSpec((None, 2, Cin), lambda n, t: (n, 0, 0)))
        args.append(stats)
    in_specs += [_const_spec((3, 3 * Cin, Cout)), _const_spec((1, Cout))]
    args += [w3, b2]
    if has_res:
        Cr = residual.shape[-1]
        in_specs.append(pl.BlockSpec((None, TH, W, Cr), lambda n, t: (n, t, 0, 0)))
        args.append(residual.astype(jnp.bfloat16))
    if has_proj:
        Cr = residual.shape[-1]
        in_specs += [_const_spec((Cr, Cout)), _const_spec((1, Cout))]
        args += [proj_w.astype(jnp.bfloat16).reshape(Cr, Cout),
                 proj_b.astype(jnp.float32).reshape(1, Cout)]

    out_shapes = [jax.ShapeDtypeStruct((N, H, W, Cout), jnp.bfloat16)]
    out_specs = [pl.BlockSpec((None, TH, W, Cout), lambda n, t: (n, t, 0, 0))]
    if emit_stats:
        out_shapes.append(jax.ShapeDtypeStruct((N, T, 2, Cout), jnp.float32))
        out_specs.append(pl.BlockSpec((None, None, 2, Cout), lambda n, t: (n, t, 0, 0)))

    kernel = functools.partial(
        _fused_conv3x3_kernel, TH, W, apply_act, has_res, has_proj, emit_stats)
    outs = pl.pallas_call(
        kernel,
        grid=(N, T),
        in_specs=in_specs,
        out_specs=tuple(out_specs) if emit_stats else out_specs[0],
        out_shape=tuple(out_shapes) if emit_stats else out_shapes[0],
        compiler_params=_compiler_params(("parallel", "parallel")),
    )(*args)

    if emit_stats:
        y, part = outs
        return y, jnp.sum(part, axis=1)    # (N, 2, Cout)
    return outs, None


# -----------------------------------------------------------------------------
# Kernel 3: native stride-2 conv3x3 (pad 1) downsample — only even rows/cols computed
# -----------------------------------------------------------------------------
def _downsample_s2_kernel(THo, Wo, x_ref, top_ref, w_ref, b_ref, o_ref):
    # x_ref: (2*THo, Wo, 2*Cin) bf16 where [..., :Cin] = col 2j, [..., Cin:] = col 2j+1
    t = pl.program_id(1)
    C2 = x_ref.shape[-1]
    Cin = C2 // 2
    Cout = o_ref.shape[-1]

    body = x_ref[...]
    top = top_ref[...]
    top = jnp.where(t > 0, top, jnp.zeros_like(top))   # row 2*oh-1 at image top -> 0

    pairs = body.reshape(THo, 2, Wo, C2)               # major-dim-only reshape (free)
    r_even = pairs[:, 0]                               # input rows 2*oh    (kh = 1)
    r_odd = pairs[:, 1]                                # input rows 2*oh+1  (kh = 2)
    if THo > 1:
        r_prev = jnp.concatenate([top, r_odd[:THo - 1]], axis=0)   # rows 2*oh-1 (kh = 0)
    else:
        r_prev = top

    def taps(rows):
        # rows: (THo, Wo, 2*Cin) -> K=3*Cin operand for stride-2 column taps
        ev = rows[:, :, 0:Cin]                         # col 2*ow     (kw = 1)
        od = rows[:, :, Cin:]                          # col 2*ow + 1 (kw = 2)
        if Wo > 1:
            lf = jnp.concatenate(                      # col 2*ow - 1 (kw = 0)
                [jnp.zeros((THo, 1, Cin), rows.dtype), od[:, :Wo - 1, :]], axis=1)
        else:
            lf = jnp.zeros((THo, 1, Cin), rows.dtype)
        return jnp.concatenate([lf, ev, od], axis=-1).reshape(THo * Wo, 3 * Cin)

    acc = jnp.dot(taps(r_prev), w_ref[0], preferred_element_type=jnp.float32)
    acc = acc + jnp.dot(taps(r_even), w_ref[1], preferred_element_type=jnp.float32)
    acc = acc + jnp.dot(taps(r_odd), w_ref[2], preferred_element_type=jnp.float32)
    acc = acc + b_ref[...]
    o_ref[...] = acc.reshape(THo, Wo, Cout).astype(o_ref.dtype)


def downsample_conv_s2(x, w, b, tile_h=None):
    """3x3 conv, stride 2, pad 1 (symmetric): (N,H,W,C) -> (N,H/2,W/2,Cout)."""
    N, H, W, C = x.shape
    assert H % 2 == 0 and W % 2 == 0, "stride-2 downsample expects even H, W"
    Cout = w.shape[-1]
    Ho, Wo = H // 2, W // 2
    THo = tile_h if tile_h is not None else _pick_tile_h(Ho, 2 * W * max(C, Cout) * 2)
    T = Ho // THo

    # Free row-major reshape: pack (even col, odd col) channel pairs on the lane dim.
    x2 = x.reshape(N, H, Wo, 2 * C)
    w3 = w.astype(jnp.bfloat16).reshape(3, 3 * C, Cout)
    b2 = b.astype(jnp.float32).reshape(1, Cout)

    in_specs = [
        pl.BlockSpec((None, 2 * THo, Wo, 2 * C), lambda n, t: (n, t, 0, 0)),
        # 1-row top halo (input row 2*THo*t - 1), clamped; masked in-kernel
        pl.BlockSpec((None, 1, Wo, 2 * C),
                     lambda n, t: (n, jnp.maximum(2 * THo * t - 1, 0), 0, 0)),
        _const_spec((3, 3 * C, Cout)),
        _const_spec((1, Cout)),
    ]
    return pl.pallas_call(
        functools.partial(_downsample_s2_kernel, THo, Wo),
        grid=(N, T),
        in_specs=in_specs,
        out_specs=pl.BlockSpec((None, THo, Wo, Cout), lambda n, t: (n, t, 0, 0)),
        out_shape=jax.ShapeDtypeStruct((N, Ho, Wo, Cout), jnp.bfloat16),
        compiler_params=_compiler_params(("parallel", "parallel")),
    )(x2, x2, w3, b2)


# -----------------------------------------------------------------------------
# Module assembly (plain-JAX glue)
# -----------------------------------------------------------------------------
def _conv_init(key, cin, cout, k=3):
    fan_in = cin * k * k
    bound = 1.0 / float(fan_in ** 0.5)
    kw, kb = jax.random.split(key)
    w = jax.random.uniform(kw, (k, k, cin, cout), jnp.float32, -bound, bound)
    b = jax.random.uniform(kb, (cout,), jnp.float32, -bound, bound)
    return {"w": w, "b": b}


def _resnet_init(key, cin, cout):
    k1, k2, k3 = jax.random.split(key, 3)
    p = {
        "g1": jnp.ones((cin,), jnp.float32), "be1": jnp.zeros((cin,), jnp.float32),
        "conv1": _conv_init(k1, cin, cout),
        "g2": jnp.ones((cout,), jnp.float32), "be2": jnp.zeros((cout,), jnp.float32),
        "conv2": _conv_init(k2, cout, cout),
    }
    if cin != cout:
        p["nin"] = _conv_init(k3, cin, cout, k=1)   # nin_shortcut (1x1)
    return p


def init_down_encoder_block_params(key, in_channels, out_channels, num_layers=1,
                                   add_downsample=True):
    keys = jax.random.split(key, num_layers + 1)
    resnets = []
    for i in range(num_layers):
        cin = in_channels if i == 0 else out_channels
        resnets.append(_resnet_init(keys[i], cin, out_channels))
    p = {"resnets": resnets, "downsample": None}
    if add_downsample:
        p["downsample"] = _conv_init(keys[-1], out_channels, out_channels)
    return p


def _resnet_apply(x, x_sums, rp, groups, eps, need_out_stats):
    N, H, W, _ = x.shape
    hw = H * W
    # norm1 + SiLU fused into conv1 (scale/shift from the input's (sum, sumsq));
    # conv1's epilogue emits the sums of its OUTPUT -> norm2 needs no extra HBM pass.
    st1 = _finalize_gn(x_sums, rp["g1"], rp["be1"], hw, groups, eps)
    h, h_sums = conv3x3_fused(x, rp["conv1"]["w"], rp["conv1"]["b"], stats=st1,
                              emit_stats=True)
    # norm2 + SiLU fused into conv2; dropout(p=0.0) == identity; residual add
    # (+ optional 1x1 nin_shortcut projection) fused into conv2; conv2 emits the
    # sums of the resnet output for the NEXT resnet's norm1 (when needed).
    st2 = _finalize_gn(h_sums, rp["g2"], rp["be2"], hw, groups, eps)
    nin = rp.get("nin")
    y, y_sums = conv3x3_fused(
        h, rp["conv2"]["w"], rp["conv2"]["b"], stats=st2, residual=x,
        proj_w=None if nin is None else nin["w"],
        proj_b=None if nin is None else nin["b"],
        emit_stats=need_out_stats)
    return y, y_sums


def down_encoder_block_forward(x_nchw, params, groups=32, eps=1e-5):
    """x_nchw: (N, Cin, H, W) f32 -> (N, Cout, H', W') f32 (NCHW, like PyTorch)."""
    x = jnp.transpose(x_nchw, (0, 2, 3, 1)).astype(jnp.bfloat16)  # NCHW -> NHWC bf16
    x_sums = tile_sums(x)   # block-input stats (the only standalone stats pass)
    n_res = len(params["resnets"])
    for i, rp in enumerate(params["resnets"]):
        x, x_sums = _resnet_apply(x, x_sums, rp, groups, eps,
                                  need_out_stats=(i + 1 < n_res))
    if params.get("downsample") is not None:
        dp = params["downsample"]
        x = downsample_conv_s2(x, dp["w"], dp["b"])   # native stride-2 kernel
    return jnp.transpose(x, (0, 3, 1, 2)).astype(jnp.float32)     # NHWC -> NCHW


# -----------------------------------------------------------------------------
if __name__ == "__main__":
    key = jax.random.PRNGKey(0)
    kz, kp = jax.random.split(key)

    # GroupNorm(32, C) requires C % 32 == 0, so the smallest valid in_channels is 32.
    N, Cin, Cout, H, W = 2, 32, 64, 16, 16
    x = jax.random.normal(kz, (N, Cin, H, W), jnp.float32)   # NCHW like PyTorch

    params = init_down_encoder_block_params(kp, Cin, Cout, num_layers=2,
                                            add_downsample=True)
    out = down_encoder_block_forward(x, params)
    out = jax.block_until_ready(out)

    assert out.shape == (N, Cout, H // 2, W // 2), out.shape
    assert bool(jnp.all(jnp.isfinite(out)))
    print("KERNEL_OK")
</pallas_src>

<mosaic_0001>
module attributes {stable_mosaic.version = 11 : i64} {
  func.func @_tile_sums_kernel(%arg0: i32, %arg1: i32, %arg2: memref<1x16x16x32xbf16, #tpu.memory_space<vmem>>, %arg3: memref<1x1x2x32xf32, #tpu.memory_space<vmem>>) attributes {dimension_semantics = [#tpu.dimension_semantics<parallel>, #tpu.dimension_semantics<parallel>], iteration_bounds = array<i64: 2, 1>, scalar_prefetch = 0 : i64, scratch_operands = 0 : i64, tpu.core_type = #tpu.core_type<tc>, window_params = [{transform_indices = @transform_0, window_bounds = array<i64: 1, 16, 16, 32>}, {transform_indices = @transform_1, window_bounds = array<i64: 1, 1, 2, 32>}]} {
    %c0 = arith.constant 0 : index
    %c0_0 = arith.constant 0 : index
    %c0_1 = arith.constant 0 : index
    %c0_2 = arith.constant 0 : index
    %0 = vector.load %arg2[%c0, %c0_0, %c0_1, %c0_2] : memref<1x16x16x32xbf16, #tpu.memory_space<vmem>>, vector<1x16x16x32xbf16>
    %1 = vector.shape_cast %0 : vector<1x16x16x32xbf16> to vector<16x16x32xbf16>
    %2 = vector.shape_cast %1 : vector<16x16x32xbf16> to vector<256x32xbf16>
    %3 = arith.extf %2 : vector<256x32xbf16> to vector<256x32xf32>
    %cst = arith.constant dense<0.000000e+00> : vector<32xf32>
    %4 = vector.multi_reduction <add>, %3, %cst [0] : vector<256x32xf32> to vector<32xf32>
    %5 = vector.shape_cast %4 : vector<32xf32> to vector<1x32xf32>
    %6 = arith.mulf %3, %3 : vector<256x32xf32>
    %cst_3 = arith.constant dense<0.000000e+00> : vector<32xf32>
    %7 = vector.multi_reduction <add>, %6, %cst_3 [0] : vector<256x32xf32> to vector<32xf32>
    %8 = vector.shape_cast %7 : vector<32xf32> to vector<1x32xf32>
    %9 = tpu.concatenate %5, %8 in 0 : vector<1x32xf32>, vector<1x32xf32> -> vector<2x32xf32>
    %c0_4 = arith.constant 0 : index
    %c0_5 = arith.constant 0 : index
    %c0_6 = arith.constant 0 : index
    %c0_7 = arith.constant 0 : index
    %10 = vector.load %arg3[%c0_4, %c0_5, %c0_6, %c0_7] : memref<1x1x2x32xf32, #tpu.memory_space<vmem>>, vector<1x1x2x32xf32>
    %11 = vector.shape_cast %10 : vector<1x1x2x32xf32> to vector<2x32xf32>
    %12 = vector.shape_cast %9 : vector<2x32xf32> to vector<1x1x2x32xf32>
    tpu.vector_store %arg3[%c0_4, %c0_5, %c0_6, %c0_7], %12 {strides = array<i32>} : memref<1x1x2x32xf32, #tpu.memory_space<vmem>>, vector<1x1x2x32xf32>,
    return
  }
  func.func @transform_0(%arg0: i32, %arg1: i32) -> (i32, i32, i32, i32) {
    %c0_i32 = arith.constant 0 : i32
    %c0_i32_0 = arith.constant 0 : i32
    %c0_i32_1 = arith.constant 0 : i32
    return %arg0, %arg1, %c0_i32, %c0_i32_0 : i32, i32, i32, i32
  }
  func.func @transform_1(%arg0: i32, %arg1: i32) -> (i32, i32, i32, i32) {
    %c0_i32 = arith.constant 0 : i32
    %c0_i32_0 = arith.constant 0 : i32
    %c0_i32_1 = arith.constant 0 : i32
    return %arg0, %arg1, %c0_i32, %c0_i32_0 : i32, i32, i32, i32
  }
}

</mosaic_0001>

<bundles_post_ra>
// kernel: tpu_custom_call.1
= control target key start
LH: loop header
LB: loop body
LE: loop exit
PB: predicated region body
PF: predicated region fallthrough
CT: control target
= control target key end

     0   :  { %6 = vsyncpa [#allocation3], 0  ;;  %s982_s0 = inlined_call_operand.hbm [shape: bf16[2,16,16,32], index: 0, kind: input, shape index: {}]   ;;  %s983_s1 = inlined_call_operand.hbm [shape: f32[2,1,2,32], index: 1, kind: output, shape index: {}]  }
   0x1   :  { %8 = vsyncpa [#allocation3 + $0x1], 0 }
   0x2   :  { %9 = vsyncpa [#allocation4], 0 }
   0x3   :  { %11 = vsyncpa [#allocation4 + $0x1], 0  ;;  %s779_s6 = smov 0   ;;  %s781_s7 = smov 0  }
   0x4   :  { %s783_s8 = smov 0   ;;  %s785_s9 = smov 0  }
   0x5   :  { %s787_s10 = smov 0   ;;  %s789_s11 = smov 0  }
   0x6 LB: > { %s495_s12 = sadd.s32 4294967295, %s765_s11   ;;  %s496_s13 = sadd.s32 4294967294, %s765_s11   ;;  %s765_s11 = sphi %s789_s11, %s17_s11   ;;  %s761_s10 = sphi %s787_s10, %s992_s10   ;;  %s757_s9 = sphi %s785_s9, %s991_s9   ;;  %s753_s8 = sphi %s783_s8, %s990_s8   ;;  %s749_s7 = sphi %s781_s7, %s989_s7   ;;  %s745_s6 = sphi %s779_s6, %s988_s6  }
   0x7   : > { %s29_s14 = sadd.s32 1, %s761_s10  ;;  %s38_s15 = sadd.s32 1, %s753_s8 }
   0x8   : > { %p31_p0 = scmp.ge.s32.totalorder %s29_s14, 2  ;;  %p45_p1 = scmp.ne.s32.totalorder %s753_s8, %s749_s7 }
   0x9   : > { %p46_p2 = scmp.eq.s32.totalorder %s765_s11, 0  ;;  %p51_p3 = scmp.ne.s32.totalorder %s749_s7, %s745_s6 }
   0xa   : > { %s994_s14 = smov (%p31_p0, %s29_s14), 0  ;;  %p52_p5 = scmp.eq.s32.totalorder %s495_s12, 0 }
   0xb   : > { %p820_p4 = por %p46_p2, %p45_p1  ;;  %s33_s17 = ssub.s32 %s761_s10, %s994_s14 }
   0xc   : > { %p77_p6 = scmp.eq.s32.totalorder %s495_s12, 1  ;;  %p36_p7 = scmp.eq.s32.totalorder %s33_s17, 0 }
   0xd   : > { %p826_p8 = por %p52_p5, %p51_p3  ;;  %p83_p10 = scmp.eq.s32.totalorder %s496_s13, 1 }
   0xe   : > { %p830_p9 = por %p77_p6, %p45_p1  ;;  %p498_p12 = scmp.ge.s32.totalorder %s765_s11, 2 }
   0xf   : > { %s835_s20 = scalar_select %p36_p7, %s753_s8, %s38_s15  }
  0x10   : > { %p837_p11 = por %p83_p10, %p51_p3  ;;  %p601_p13 = scmp.lt.s32.totalorder %s765_s11, 2 }
  0x11   : > { %s103_s22 = sand.u32 1, %s753_s8   ;;  %s509_s24 = sshll.u32 %s761_s10, 7 }
  0x12   : > { %s499_s23 = sshll.u32 %s103_s22, 7  ;;  %s115_s27 = scalar_lea.hbm %s982_s0, %s509_s24 }
  0x13   : > { %s107_s28 = scalar_lea.vmem [#allocation2], %s499_s23  ;;  %s116_s30 = sshll.u32 %s115_s27, 4  ;;  %s117_s30 = int_to_ptr.hbm [resolvable:$true] %s116_s30 }
  0x14   : > { %s118_s29 = sshll.u32 %s107_s28, 4  ;;  %p594_p0 = pnand %p601_p13, %p820_p4  ;;  %s119_s29 = int_to_ptr.vmem [resolvable:$true] %s118_s29 }
  0x15   : > { %p502_p1 = scmp.ge.s32.totalorder %s765_s11, 1  ;;  %s104_s2 = scalar_lea.sflag [#allocation3], %s103_s22 }
  0x16   : > { %s767_s3 = smov 64   ;;  %s768_s4 = smov 4  }
  0x17   : > { %596 = dma.hbm_to_vmem [thread:$0]  (!%p594_p0), %s117_s30, 2048, %s119_s29, %s104_s2, %s767_s3, %s767_s3, %s768_s4  }
  0x18   : > { %p126_p2 = scmp.lt.s32.totalorder %s765_s11, 3 }
  0x1a   : > { %p127_p3 = pnand %p502_p1, %p126_p2 }
  0x1b   : > { %s853_s5 = sand.u32 (!%p127_p3), 1, %s749_s7  }
  0x1c   : > { %130 = sbr.rel (%p127_p3) target bundleno = 121 (0x79), region = 24  ;;  %s503_s12 = sshll.u32 (!%p127_p3), %s853_s5, 7 }
  0x1d   : > { %s133_s13 = scalar_lea.sflag (!%p127_p3), [#allocation3], %s853_s5  ;;  %s857_s15 = scalar_lea.vmem (!%p127_p3), [#allocation2], %s503_s12 }
  0x21   : > { %736 = dma.done.wait (%p826_p8), %s133_s13, 2048  }
  0x22   : > { %738 = vsyncadd (%p826_p8), %s133_s13, 4294965248  ;;  %v511_v0 = vld [vmem:[%s857_s15] sm:$0xff]   ;;  %v574_v1 = vld [vmem:[%s857_s15 + $0x8] sm:$0xff]   ;;  %vm221_vm0 = vcmask 261120   ;;  %s504_s16 = sshll.u32 %s853_s5, 1  ;;  %s506_s17 = sshll.u32 %s757_s9, 1 }
  0x23   : > { %v512_v2 = vunpack.c.l.bf16 %v511_v0  ;;  %v513_v3 = vunpack.c.h.bf16 %v511_v0  ;;  %v516_v4 = vunpack.c.l.bf16 %v574_v1  ;;  %v575_v5 = vld [vmem:[%s857_s15 + $0x10] sm:$0xff]   ;;  %v517_v6 = vunpack.c.h.bf16 %v574_v1  ;;  %v576_v13 = vld [vmem:[%s857_s15 + $0x18] sm:$0xff]   ;;  %v577_v20 = vld [vmem:[%s857_s15 + $0x20] sm:$0xff]   ;;  %s408_s23 = scalar_lea.hbm %s983_s1, %s506_s17  ;;  %s155_s24 = scalar_lea.vmem [#allocation5], %s504_s16 }
  0x24   : > { %v520_v11 = vunpack.c.l.bf16 %v575_v5  ;;  %v521_v15 = vunpack.c.h.bf16 %v575_v5  ;;  %v524_v18 = vunpack.c.l.bf16 %v576_v13  ;;  %v525_v22 = vunpack.c.h.bf16 %v576_v13  ;;  %v578_v30 = vld [vmem:[%s857_s15 + $0x28] sm:$0xff]   ;;  %v579_v43 = vld [vmem:[%s857_s15 + $0x30] sm:$0xff]   ;;  %v580_v56 = vld [vmem:[%s857_s15 + $0x38] sm:$0xff]   ;;  %s410_s25 = sshll.u32 %s155_s24, 4  ;;  %s412_s26 = sshll.u32 %s408_s23, 4  ;;  %s411_s25 = int_to_ptr.vmem [resolvable:$true] %s410_s25  ;;  %s413_s26 = int_to_ptr.hbm [resolvable:$true] %s412_s26 }
  0x25   : > { %v222_v7 = vsel %vm221_vm0, %v512_v2, 0.0  ;;  %v223_v8 = vsel %vm221_vm0, %v513_v3, 0.0  ;;  %v225_v9 = vsel %vm221_vm0, %v516_v4, 0.0  ;;  %v227_v12 = vsel %vm221_vm0, %v517_v6, 0.0  ;;  %v581_v5 = vld [vmem:[%s857_s15 + $0x40] sm:$0xff]   ;;  %s397_s9 = scalar_lea.sflag [#allocation4], %s853_s5 }
  0x26   : > { %v224_v10 = vadd.f32 %v223_v8, %v222_v7  ;;  %v229_v16 = vsel %vm221_vm0, %v520_v11, 0.0  ;;  %v231_v19 = vsel %vm221_vm0, %v521_v15, 0.0  ;;  %v233_v23 = vsel %vm221_vm0, %v524_v18, 0.0  ;;  %s697_s27 = sshra.s32 %s413_s26, 4  ;;  %s703_s2 = scalar_lea.hbm %s983_s1, 4  ;;  %s698_s27 = int_to_ptr.hbm [resolvable:$true] %s697_s27 }
  0x27   : > { %v291_v24 = vmul.f32 %v512_v2, %v512_v2  ;;  %v292_v26 = vmul.f32 %v513_v3, %v513_v3  ;;  %v293_v27 = vmul.f32 %v516_v4, %v516_v4  ;;  %v528_v28 = vunpack.c.l.bf16 %v577_v20  ;;  %s699_s28 = scalar_lea.hbm %s698_s27, 2  ;;  %p704_p7 = scmp.lt.s32.totalorder %s698_s27, %s983_s1 }
  0x28   : > { %v226_v14 = vadd.f32 %v225_v9, %v224_v10  ;;  %v235_v29 = vsel %vm221_vm0, %v525_v22, 0.0  ;;  %v294_v32 = vmul.f32 %v517_v6, %v517_v6  ;;  %v529_v33 = vunpack.c.h.bf16 %v577_v20  ;;  %p700_p4 = scmp.ne.s32.totalorder %s698_s27, %s699_s28  ;;  %p705_p8 = scmp.lt.s32.totalorder %s703_s2, %s699_s28 }
  0x29   : > { %v237_v34 = vsel %vm221_vm0, %v528_v28, 0.0  ;;  %v323_v35 = vsel %vm221_vm0, %v291_v24, 0.0  ;;  %v295_v37 = vmul.f32 %v520_v11, %v520_v11  ;;  %v324_v38 = vsel %vm221_vm0, %v292_v26, 0.0 }
  0x2a   : > { %v228_v17 = vadd.f32 %v227_v12, %v226_v14  ;;  %v326_v39 = vsel %vm221_vm0, %v293_v27, 0.0  ;;  %v532_v40 = vunpack.c.l.bf16 %v578_v30  ;;  %v239_v41 = vsel %vm221_vm0, %v529_v33, 0.0  ;;  %p701_p5 = pnand %p700_p4, %p830_p9  ;;  %p706_p10 = por %p705_p8, %p704_p7 }
  0x2b   : > { %v325_v42 = vadd.f32 %v324_v38, %v323_v35  ;;  %v296_v45 = vmul.f32 %v521_v15, %v521_v15  ;;  %v328_v46 = vsel %vm221_vm0, %v294_v32, 0.0  ;;  %v533_v47 = vunpack.c.h.bf16 %v578_v30 }
  0x2c   : > { %v230_v21 = vadd.f32 %v229_v16, %v228_v17  ;;  %v241_v48 = vsel %vm221_vm0, %v532_v40, 0.0  ;;  %v297_v51 = vmul.f32 %v524_v18, %v524_v18  ;;  %v330_v52 = vsel %vm221_vm0, %v295_v37, 0.0  ;;  %v582_v18 = vld [vmem:[%s857_s15 + $0x48] sm:$0xff]   ;;  %p702_p6 = pneg %p701_p5 }
  0x2d   : > { %v327_v49 = vadd.f32 %v326_v39, %v325_v42  ;;  %v536_v53 = vunpack.c.l.bf16 %v579_v43  ;;  %v243_v54 = vsel %vm221_vm0, %v533_v47, 0.0  ;;  %v298_v58 = vmul.f32 %v525_v22, %v525_v22 }
  0x2e   : > { %v232_v25 = vadd.f32 %v231_v19, %v230_v21  ;;  %v332_v59 = vsel %vm221_vm0, %v296_v45, 0.0  ;;  %v537_v60 = vunpack.c.h.bf16 %v579_v43  ;;  %v299_v0 = vmul.f32 %v528_v28, %v528_v28  ;;  %p707_p13 = pnand %p706_p10, %p702_p6 }
  0x2f   : > { %v329_v55 = vadd.f32 %v328_v46, %v327_v49  ;;  %v245_v61 = vsel %vm221_vm0, %v536_v53, 0.0  ;;  %v334_v1 = vsel %vm221_vm0, %v297_v51, 0.0  ;;  %v540_v2 = vunpack.c.l.bf16 %v580_v56 }
  0x30   : > { %v234_v31 = vadd.f32 %v233_v23, %v232_v25  ;;  %v247_v3 = vsel %vm221_vm0, %v537_v60, 0.0  ;;  %v300_v7 = vmul.f32 %v529_v33, %v529_v33  ;;  %v336_v8 = vsel %vm221_vm0, %v298_v58, 0.0 }
  0x31   : > { %v331_v62 = vadd.f32 %v330_v52, %v329_v55  ;;  %v541_v9 = vunpack.c.h.bf16 %v580_v56  ;;  %v249_v10 = vsel %vm221_vm0, %v540_v2, 0.0  ;;  %v301_v13 = vmul.f32 %v532_v40, %v532_v40 }
  0x32   : > { %v236_v36 = vadd.f32 %v235_v29, %v234_v31  ;;  %v338_v14 = vsel %vm221_vm0, %v299_v0, 0.0  ;;  %v544_v15 = vunpack.c.l.bf16 %v581_v5  ;;  %v302_v20 = vmul.f32 %v533_v47, %v533_v47  ;;  %v583_v31 = vld [vmem:[%s857_s15 + $0x50] sm:$0xff]  }
  0x33   : > { %v333_v4 = vadd.f32 %v332_v59, %v331_v62  ;;  %v251_v16 = vsel %vm221_vm0, %v541_v9, 0.0  ;;  %v340_v21 = vsel %vm221_vm0, %v300_v7, 0.0  ;;  %v545_v22 = vunpack.c.h.bf16 %v581_v5 }
  0x34   : > { %v238_v44 = vadd.f32 %v237_v34, %v236_v36  ;;  %v253_v23 = vsel %vm221_vm0, %v544_v15, 0.0  ;;  %v303_v26 = vmul.f32 %v536_v53, %v536_v53  ;;  %v342_v27 = vsel %vm221_vm0, %v301_v13, 0.0 }
  0x35   : > { %v335_v11 = vadd.f32 %v334_v1, %v333_v4  ;;  %v548_v28 = vunpack.c.l.bf16 %v582_v18  ;;  %v255_v29 = vsel %vm221_vm0, %v545_v22, 0.0  ;;  %v304_v33 = vmul.f32 %v537_v60, %v537_v60 }
  0x36   : > { %v240_v50 = vadd.f32 %v239_v41, %v238_v44  ;;  %v344_v34 = vsel %vm221_vm0, %v302_v20, 0.0  ;;  %v549_v35 = vunpack.c.h.bf16 %v582_v18  ;;  %v305_v39 = vmul.f32 %v540_v2, %v540_v2  ;;  %v584_v44 = vld [vmem:[%s857_s15 + $0x58] sm:$0xff]  }
  0x37   : > { %v337_v17 = vadd.f32 %v336_v8, %v335_v11  ;;  %v257_v36 = vsel %vm221_vm0, %v548_v28, 0.0  ;;  %v346_v40 = vsel %vm221_vm0, %v303_v26, 0.0  ;;  %v552_v41 = vunpack.c.l.bf16 %v583_v31 }
  0x38   : > { %v242_v57 = vadd.f32 %v241_v48, %v240_v50  ;;  %v259_v42 = vsel %vm221_vm0, %v549_v35, 0.0  ;;  %v306_v46 = vmul.f32 %v541_v9, %v541_v9  ;;  %v348_v47 = vsel %vm221_vm0, %v304_v33, 0.0 }
  0x39   : > { %v339_v24 = vadd.f32 %v338_v14, %v337_v17  ;;  %v553_v48 = vunpack.c.h.bf16 %v583_v31  ;;  %v261_v49 = vsel %vm221_vm0, %v552_v41, 0.0  ;;  %v307_v52 = vmul.f32 %v544_v15, %v544_v15 }
  0x3a   : > { %v244_v63 = vadd.f32 %v243_v54, %v242_v57  ;;  %v350_v53 = vsel %vm221_vm0, %v305_v39, 0.0  ;;  %v556_v54 = vunpack.c.l.bf16 %v584_v44  ;;  %v585_v57 = vld [vmem:[%s857_s15 + $0x60] sm:$0xff]   ;;  %v308_v59 = vmul.f32 %v545_v22, %v545_v22 }
  0x3b   : > { %v341_v30 = vadd.f32 %v340_v21, %v339_v24  ;;  %v263_v55 = vsel %vm221_vm0, %v553_v48, 0.0  ;;  %v352_v60 = vsel %vm221_vm0, %v306_v46, 0.0  ;;  %v309_v1 = vmul.f32 %v548_v28, %v548_v28 }
  0x3c   : > { %v246_v6 = vadd.f32 %v245_v61, %v244_v63  ;;  %v557_v61 = vunpack.c.h.bf16 %v584_v44  ;;  %v265_v62 = vsel %vm221_vm0, %v556_v54, 0.0  ;;  %v354_v2 = vsel %vm221_vm0, %v307_v52, 0.0 }
  0x3d   : > { %v343_v37 = vadd.f32 %v342_v27, %v341_v30  ;;  %v310_v8 = vmul.f32 %v549_v35, %v549_v35  ;;  %v356_v9 = vsel %vm221_vm0, %v308_v59, 0.0  ;;  %v311_v14 = vmul.f32 %v552_v41, %v552_v41 }
  0x3e   : > { %v248_v12 = vadd.f32 %v247_v3, %v246_v6  ;;  %v560_v3 = vunpack.c.l.bf16 %v585_v57  ;;  %v267_v4 = vsel %vm221_vm0, %v557_v61, 0.0  ;;  %v586_v6 = vld [vmem:[%s857_s15 + $0x68] sm:$0xff]   ;;  %v358_v15 = vsel %vm221_vm0, %v309_v1, 0.0 }
  0x3f   : > { %v345_v43 = vadd.f32 %v344_v34, %v343_v37  ;;  %v312_v21 = vmul.f32 %v553_v48, %v553_v48  ;;  %v360_v22 = vsel %vm221_vm0, %v310_v8, 0.0  ;;  %v313_v27 = vmul.f32 %v556_v54, %v556_v54 }
  0x40   : > { %v250_v19 = vadd.f32 %v249_v10, %v248_v12  ;;  %v561_v10 = vunpack.c.h.bf16 %v585_v57  ;;  %v269_v11 = vsel %vm221_vm0, %v560_v3, 0.0  ;;  %v362_v28 = vsel %vm221_vm0, %v311_v14, 0.0 }
  0x41   : > { %v347_v50 = vadd.f32 %v346_v40, %v345_v43  ;;  %v314_v34 = vmul.f32 %v557_v61, %v557_v61  ;;  %v364_v35 = vsel %vm221_vm0, %v312_v21, 0.0  ;;  %v315_v40 = vmul.f32 %v560_v3, %v560_v3 }
  0x42   : > { %v252_v25 = vadd.f32 %v251_v16, %v250_v19  ;;  %v564_v16 = vunpack.c.l.bf16 %v586_v6  ;;  %v271_v17 = vsel %vm221_vm0, %v561_v10, 0.0  ;;  %v587_v19 = vld [vmem:[%s857_s15 + $0x70] sm:$0xff]   ;;  %v366_v41 = vsel %vm221_vm0, %v313_v27, 0.0 }
  0x43   : > { %v349_v56 = vadd.f32 %v348_v47, %v347_v50  ;;  %v316_v46 = vmul.f32 %v561_v10, %v561_v10  ;;  %v368_v47 = vsel %vm221_vm0, %v314_v34, 0.0  ;;  %vm392_vm1 = vcmask 1040384  }
  0x44   : > { %v254_v32 = vadd.f32 %v253_v23, %v252_v25  ;;  %v565_v23 = vunpack.c.h.bf16 %v586_v6  ;;  %v273_v24 = vsel %vm221_vm0, %v564_v16, 0.0  ;;  %v317_v52 = vmul.f32 %v564_v16, %v564_v16 }
  0x45   : > { %v351_v63 = vadd.f32 %v350_v53, %v349_v56  ;;  %v370_v53 = vsel %vm221_vm0, %v315_v40, 0.0  ;;  %vm394_vm2 = vcmask 254976  }
  0x46   : > { %v256_v38 = vadd.f32 %v255_v29, %v254_v32  ;;  %v568_v29 = vunpack.c.l.bf16 %v587_v19  ;;  %v275_v30 = vsel %vm221_vm0, %v565_v23, 0.0  ;;  %v588_v32 = vld [vmem:[%s857_s15 + $0x78] sm:$0xff]   ;;  %v318_v57 = vmul.f32 %v565_v23, %v565_v23 }
  0x47   : > { %v353_v5 = vadd.f32 %v352_v60, %v351_v63  ;;  %v573_v48 = vunpack.c.h.bf16 %v588_v32 }
  0x48   : > { %v258_v45 = vadd.f32 %v257_v36, %v256_v38  ;;  %v569_v36 = vunpack.c.h.bf16 %v587_v19  ;;  %v277_v37 = vsel %vm221_vm0, %v568_v29, 0.0  ;;  %v319_v61 = vmul.f32 %v568_v29, %v568_v29 }
  0x49   : > { %v355_v12 = vadd.f32 %v354_v2, %v353_v5  ;;  %v283_v54 = vsel %vm221_vm0, %v573_v48, 0.0  ;;  %v376_v1 = vsel %vm221_vm0, %v318_v57, 0.0 }
  0x4a   : > { %v260_v51 = vadd.f32 %v259_v42, %v258_v45  ;;  %v572_v42 = vunpack.c.l.bf16 %v588_v32  ;;  %v279_v43 = vsel %vm221_vm0, %v569_v36, 0.0  ;;  %v378_v5 = vsel %vm221_vm0, %v319_v61, 0.0 }
  0x4b   : > { %v357_v18 = vadd.f32 %v356_v9, %v355_v12 }
  0x4c   : > { %v262_v58 = vadd.f32 %v261_v49, %v260_v51  ;;  %v281_v49 = vsel %vm221_vm0, %v572_v42, 0.0 }
  0x4d   : > { %v359_v25 = vadd.f32 %v358_v15, %v357_v18 }
  0x4e   : > { %v264_v0 = vadd.f32 %v263_v55, %v262_v58  ;;  %v372_v58 = vsel %vm221_vm0, %v316_v46, 0.0 }
  0x4f   : > { %v361_v31 = vadd.f32 %v360_v22, %v359_v25 }
  0x50   : > { %v266_v7 = vadd.f32 %v265_v62, %v264_v0  ;;  %v374_v62 = vsel %vm221_vm0, %v317_v52, 0.0  ;;  %v320_v0 = vmul.f32 %v569_v36, %v569_v36 }
  0x51   : > { %v363_v38 = vadd.f32 %v362_v28, %v361_v31 }
  0x52   : > { %v268_v13 = vadd.f32 %v267_v4, %v266_v7  ;;  %v321_v4 = vmul.f32 %v572_v42, %v572_v42  ;;  %v322_v7 = vmul.f32 %v573_v48, %v573_v48  ;;  %v380_v8 = vsel %vm221_vm0, %v320_v0, 0.0 }
  0x53   : > { %v365_v44 = vadd.f32 %v364_v35, %v363_v38 }
  0x54   : > { %v270_v20 = vadd.f32 %v269_v11, %v268_v13  ;;  %v382_v11 = vsel %vm221_vm0, %v321_v4, 0.0  ;;  %v384_v13 = vsel %vm221_vm0, %v322_v7, 0.0 }
  0x55   : > { %v367_v50 = vadd.f32 %v366_v41, %v365_v44 }
  0x56   : > { %v272_v26 = vadd.f32 %v271_v17, %v270_v20 }
  0x57   : > { %v369_v55 = vadd.f32 %v368_v47, %v367_v50 }
  0x58   : > { %v274_v33 = vadd.f32 %v273_v24, %v272_v26 }
  0x59   : > { %v371_v59 = vadd.f32 %v370_v53, %v369_v55 }
  0x5a   : > { %v276_v39 = vadd.f32 %v275_v30, %v274_v33 }
  0x5b   : > { %v373_v63 = vadd.f32 %v372_v58, %v371_v59 }
  0x5c   : > { %v278_v45 = vadd.f32 %v277_v37, %v276_v39 }
  0x5d   : > { %v375_v3 = vadd.f32 %v374_v62, %v373_v63 }
  0x5e   : > { %v280_v51 = vadd.f32 %v279_v43, %v278_v45 }
  0x5f   : > { %v377_v6 = vadd.f32 %v376_v1, %v375_v3 }
  0x60   : > { %v282_v56 = vadd.f32 %v281_v49, %v280_v51 }
  0x61   : > { %v379_v10 = vadd.f32 %v378_v5, %v377_v6 }
  0x62   : > { %v284_v60 = vadd.f32 %v283_v54, %v282_v56 }
  0x63   : > { %v381_v12 = vadd.f32 %v380_v8, %v379_v10 }
  0x64   : > { %v285_v2 = vrot.slane %v284_v60, 4 }
  0x65   : > { %v383_v15 = vadd.f32 %v382_v11, %v381_v12 }
  0x66   : > { %v286_v9 = vadd.f32 %v285_v2, %v284_v60 }
  0x67   : > { %v385_v16 = vadd.f32 %v384_v13, %v383_v15 }
  0x68   : > { %v287_v14 = vrot.slane %v286_v9, 2 }
  0x69   : > { %v386_v18 = vrot.slane %v385_v16, 4 }
  0x6a   : > { %v288_v17 = vadd.f32 %v287_v14, %v286_v9 }
  0x6b   : > { %v387_v19 = vadd.f32 %v386_v18, %v385_v16 }
  0x6c   : > { %v289_v20 = vrot.slane %v288_v17, 1 }
  0x6d   : > { %v388_v21 = vrot.slane %v387_v19, 2 }
  0x6e   : > { %v290_v23 = vadd.f32 %v289_v20, %v288_v17 }
  0x6f   : > { %v389_v22 = vadd.f32 %v388_v21, %v387_v19 }
  0x71   : > { %v390_v24 = vrot.slane %v389_v22, 1 }
  0x73   : > { %v391_v25 = vadd.f32 %v390_v24, %v389_v22 }
  0x75   : > { %v393_v26 = vsel %vm392_vm1, %v290_v23, %v391_v25 }
  0x76   : > { %395 = vst.msk [vmem:[%s155_s24] sm:$0x3] %vm394_vm2, %v393_v26 }
  0x77   : > { %710 = shalt.err (!%p707_p13)
}
  0x78   : > { %591 = dma.vmem_to_hbm [thread:$0]  (%p830_p9), %s411_s25, 32, %s413_s26, %s397_s9  }
  0x79 PF: > { %s424_s5 = sand.u32 1, %s745_s6   ;;  %p598_p0 = pnand %p498_p12, %p837_p11 }
  0x7a   : > { %s425_s12 = scalar_lea.sflag [#allocation4], %s424_s5 }
  0x7b   : > { %p599_p1 = pneg %p598_p0 }
  0x7d   : > { %740 = dma.done.wait (%p599_p1), %s425_s12, 32  }
  0x7e   : > { %742 = vsyncadd (%p599_p1), %s425_s12, 4294967264  ;;  %s17_s11 = sadd.s32 1, %s765_s11   ;;  %s988_s6 = smov %s749_s7 }
  0x7f   : > { %p14_p2 = scmp.ge.s32.totalorder %s17_s11, 4   ;;  %s989_s7 = smov %s753_s8 }
  0x80   : > { %s990_s8 = smov %s835_s20  ;;  %s991_s9 = smov %s761_s10 }
  0x81   : > { %s992_s10 = smov %s994_s14  ;;  %16 = sbr.rel (!%p14_p2) target bundleno = 6 (0x6), region = 69 }
  0x86   :  { %431 = vsyncpa [#allocation3], 1 }
  0x87   :  { %433 = vsyncpa [#allocation3 + $0x1], 1 }
  0x88   :  { %434 = vsyncpa [#allocation4], 1 }
  0x89   :  { %436 = vsyncpa [#allocation4 + $0x1], 1 }

</bundles_post_ra>
